<compile_context>
chip_gen: v6e
topology: v6e:2x2x1
jax: 0.10.0
libtpu: 0.0.40
codegen_flags: <defaults>
</compile_context>

<pallas_src>
import functools

import jax
import jax.numpy as jnp
from jax import lax
from jax.experimental import pallas as pl
from jax.experimental.pallas import tpu as pltpu


def _round_up(x: int, m: int) -> int:
    return ((x + m - 1) // m) * m


def _weighted_l2_kernel(wcs_sq_ref, wds_sq_ref, cs_ref, ds_ref, out_ref, *,
                        nonneg_weight: bool):
    # wcs_sq_ref: (grid_i, TM, 1)  VMEM-resident, weight * |cs_i|^2
    # wds_sq_ref: (grid_j, 1, TN)  VMEM-resident, weight * |ds_j|^2 (lane-major)
    # cs_ref    : (TM, Dp)         tracklet tile, pre-scaled by -2*weight
    # ds_ref    : (TN, Dp)         detection tile
    # out_ref   : (TM, TN)         weighted cost tile
    dots = lax.dot_general(                        # MXU: (TM,Dp) x (TN,Dp)^T
        cs_ref[...], ds_ref[...],
        dimension_numbers=(((1,), (1,)), ((), ())),
        preferred_element_type=jnp.float32,
    )                                              # = -2*w * (c . d)
    row = wcs_sq_ref[pl.program_id(0)]             # (TM, 1)
    col = wds_sq_ref[pl.program_id(1)]             # (1, TN)
    wdist = row + col + dots                       # w*(|c|^2 + |d|^2 - 2 c.d)
    # Numerical hygiene: squared L2 >= 0; cancellation in a^2+b^2-2ab can go
    # slightly past zero.  Clamp toward the sign `weight` imposes (weight is
    # static, so this branch is resolved at trace time).
    if nonneg_weight:
        wdist = jnp.maximum(wdist, 0.0)
    else:
        wdist = jnp.minimum(wdist, 0.0)
    out_ref[...] = wdist.astype(out_ref.dtype)


def weighted_cost(cs, ds, weight, *, block_n=512, block_m=512,
                  out_dtype=jnp.float32, mxu_dtype=None):
    """weight * pairwise_squared_L2(cs, ds) -> (N, M) in out_dtype.

    mxu_dtype:  cast the matmul operands (e.g. jnp.bfloat16 on v6e/v7x for
                native-MXU speed and half the input DMA traffic).
    out_dtype:  bf16 halves the dominant HBM writeback traffic if the
                downstream assignment solver tolerates it.
    """
    n, d = cs.shape
    m, d2 = ds.shape
    assert d == d2, "embedding dims must match"
    w = float(weight)                       # static, as in the PyTorch module

    # Minimal hardware padding only (no padding up to tile multiples):
    #   N -> multiple of 8 (sublane), M -> multiple of 128 (lane),
    #   D -> multiple of 128 (keeps native lane tiling for the MXU operands).
    n_pad = _round_up(n, 8)
    m_pad = _round_up(m, 128)
    d_pad = _round_up(d, 128)

    # User tile sizes rounded to hardware multiples and clipped to the problem.
    tm = min(_round_up(block_n, 8), n_pad)
    tn = min(_round_up(block_m, 128), m_pad)
    # v7x megacore: make sure at least one "parallel" axis has >= 2 tiles.
    if pl.cdiv(n_pad, tm) == 1 and pl.cdiv(m_pad, tn) == 1:
        if m_pad >= 256:
            tn = _round_up(pl.cdiv(m_pad, 2), 128)
        elif n_pad >= 16:
            tm = _round_up(pl.cdiv(n_pad, 2), 8)
    grid = (pl.cdiv(n_pad, tm), pl.cdiv(m_pad, tn))
    g_i, g_j = grid

    cs32 = cs.astype(jnp.float32)
    ds32 = ds.astype(jnp.float32)

    # Hoisted, weight-folded squared norms (O((N+M)D) prolog).  Stored as
    # (grid, tile, 1) / (grid, 1, tile) so the kernel picks its tile with a
    # single leading-axis dynamic index — no per-tile DMA, no relayout.
    wcs = w * jnp.sum(cs32 * cs32, axis=-1)                       # (n,)
    wds = w * jnp.sum(ds32 * ds32, axis=-1)                       # (m,)
    wcs_sq = jnp.zeros((g_i * tm,), jnp.float32).at[:n].set(wcs).reshape(g_i, tm, 1)
    wds_sq = jnp.zeros((g_j * tn,), jnp.float32).at[:m].set(wds).reshape(g_j, 1, tn)

    # MXU operands: fold -2*weight into cs (removes the per-tile scalar
    # multiply from the hot loop), zero-pad, optionally cast for the MXU.
    op_dtype = jnp.dtype(mxu_dtype) if mxu_dtype is not None \
        else jnp.result_type(cs.dtype, ds.dtype)
    cs_mxu = jnp.zeros((n_pad, d_pad), op_dtype).at[:n, :d].set(
        ((-2.0 * w) * cs32).astype(op_dtype))
    ds_mxu = jnp.zeros((m_pad, d_pad), op_dtype).at[:m, :d].set(
        ds32.astype(op_dtype))

    out_bytes = jnp.dtype(out_dtype).itemsize
    op_bytes = jnp.dtype(op_dtype).itemsize

    # Double-buffered tiles + resident norms, with headroom; v5e's scoped
    # VMEM default (16 MiB) would otherwise gate larger tiles.
    vmem_need = 2 * (tm * tn * out_bytes + (tm + tn) * d_pad * op_bytes)
    vmem_limit = int(min(max(4 * vmem_need + (4 << 20), 32 << 20), 56 << 20))

    cost = pl.CostEstimate(
        flops=2 * n_pad * m_pad * d_pad,
        transcendentals=0,
        bytes_accessed=int(n_pad * m_pad * out_bytes            # output
                           + n_pad * d_pad * op_bytes           # cs, read once
                           + g_i * m_pad * d_pad * op_bytes     # ds re-stream
                           + (g_i * tm + g_j * tn) * 4),        # norms
    )

    kernel = functools.partial(_weighted_l2_kernel, nonneg_weight=(w >= 0.0))

    out = pl.pallas_call(
        kernel,
        out_shape=jax.ShapeDtypeStruct((n_pad, m_pad), out_dtype),
        grid=grid,
        in_specs=[
            pl.BlockSpec(memory_space=pltpu.MemorySpace.VMEM),   # w*|cs|^2 (resident)
            pl.BlockSpec(memory_space=pltpu.MemorySpace.VMEM),   # w*|ds|^2 (resident)
            pl.BlockSpec((tm, d_pad), lambda i, j: (i, 0)),      # cs tile (i-resident)
            pl.BlockSpec((tn, d_pad), lambda i, j: (j, 0)),      # ds tile (streamed)
        ],
        out_specs=pl.BlockSpec((tm, tn), lambda i, j: (i, j)),
        compiler_params=pltpu.CompilerParams(
            dimension_semantics=("parallel", "parallel"),
            vmem_limit_bytes=vmem_limit),
        cost_estimate=cost,
    )(wcs_sq, wds_sq, cs_mxu, ds_mxu)

    return out[:n, :m]


def _reference(cs, ds, weight):
    diff = cs[:, None, :].astype(jnp.float32) - ds[None, :, :].astype(jnp.float32)
    return weight * jnp.sum(diff * diff, axis=-1)


if __name__ == "__main__":
    key = jax.random.PRNGKey(0)
    k1, k2, k3, k4 = jax.random.split(key, 4)

    # Small shapes consistent with the tracking module: N tracklets x M
    # detections, D-dim embeddings.
    N, M, D = 8, 16, 32
    WEIGHT = 0.5
    cs = jax.random.normal(k1, (N, D), dtype=jnp.float32)
    ds = jax.random.normal(k2, (M, D), dtype=jnp.float32)

    out = jax.block_until_ready(weighted_cost(cs, ds, WEIGHT))
    ref = _reference(cs, ds, WEIGHT)
    assert out.shape == (N, M)
    assert jnp.allclose(out, ref, atol=1e-4, rtol=1e-4)

    # Awkward sizes: exercises minimal padding, multi-tile grid, partial blocks.
    N2, M2, D2 = 300, 400, 64
    cs2 = jax.random.normal(k3, (N2, D2), dtype=jnp.float32)
    ds2 = jax.random.normal(k4, (M2, D2), dtype=jnp.float32)
    out2 = jax.block_until_ready(weighted_cost(cs2, ds2, WEIGHT))
    ref2 = _reference(cs2, ds2, WEIGHT)
    assert out2.shape == (N2, M2)
    assert jnp.allclose(out2, ref2, atol=1e-3, rtol=1e-4)

    # Negative weight path (epilogue clamps toward the imposed sign).
    out3 = jax.block_until_ready(weighted_cost(cs2, ds2, -0.25))
    ref3 = _reference(cs2, ds2, -0.25)
    assert jnp.allclose(out3, ref3, atol=1e-3, rtol=1e-4)

    # bf16 MXU operands + bf16 output: the low-traffic path for v6e/v7x.
    out4 = jax.block_until_ready(
        weighted_cost(cs2, ds2, WEIGHT, mxu_dtype=jnp.bfloat16,
                      out_dtype=jnp.bfloat16))
    assert out4.dtype == jnp.bfloat16
    assert jnp.allclose(out4.astype(jnp.float32), ref2, atol=1.0, rtol=2e-2)

    print("KERNEL_OK")
</pallas_src>

<mosaic_0001>
module attributes {stable_mosaic.version = 11 : i64} {
  func.func @_weighted_l2_kernel(%arg0: i32, %arg1: i32, %arg2: memref<1x8x1xf32, #tpu.memory_space<vmem>>, %arg3: memref<1x1x128xf32, #tpu.memory_space<vmem>>, %arg4: memref<8x128xf32, #tpu.memory_space<vmem>>, %arg5: memref<128x128xf32, #tpu.memory_space<vmem>>, %arg6: memref<8x128xf32, #tpu.memory_space<vmem>>) attributes {dimension_semantics = [#tpu.dimension_semantics<parallel>, #tpu.dimension_semantics<parallel>], iteration_bounds = array<i64: 1, 1>, scalar_prefetch = 0 : i64, scratch_operands = 0 : i64, tpu.core_type = #tpu.core_type<tc>, window_params = [{pipeline_mode = #tpu.pipeline_mode<synchronous>, transform_indices = @transform_0, window_bounds = array<i64: 1, 8, 1>}, {pipeline_mode = #tpu.pipeline_mode<synchronous>, transform_indices = @transform_1, window_bounds = array<i64: 1, 1, 128>}, {transform_indices = @transform_2, window_bounds = array<i64: 8, 128>}, {transform_indices = @transform_3, window_bounds = array<i64: 128, 128>}, {transform_indices = @transform_4, window_bounds = array<i64: 8, 128>}]} {
    %c0 = arith.constant 0 : index
    %c0_0 = arith.constant 0 : index
    %0 = vector.load %arg4[%c0, %c0_0] : memref<8x128xf32, #tpu.memory_space<vmem>>, vector<8x128xf32>
    %c0_1 = arith.constant 0 : index
    %c0_2 = arith.constant 0 : index
    %1 = vector.load %arg5[%c0_1, %c0_2] : memref<128x128xf32, #tpu.memory_space<vmem>>, vector<128x128xf32>
    %cst = arith.constant dense<0.000000e+00> : vector<8x128xf32>
    %2 = tpu.matmul %0, %1, %cst {dimension_numbers = #tpu.dot_dimension_numbers<[1], [1], [0], [0], [0, 0, 1, 0], [], []>} : vector<8x128xf32>, vector<128x128xf32>, vector<8x128xf32> -> vector<8x128xf32>
    %3 = arith.index_cast %arg0 : i32 to index
    %c0_3 = arith.constant 0 : index
    %c0_4 = arith.constant 0 : index
    %4 = vector.load %arg2[%3, %c0_3, %c0_4] : memref<1x8x1xf32, #tpu.memory_space<vmem>>, vector<1x8x1xf32>
    %5 = vector.shape_cast %4 : vector<1x8x1xf32> to vector<8x1xf32>
    %6 = arith.index_cast %arg1 : i32 to index
    %c0_5 = arith.constant 0 : index
    %c0_6 = arith.constant 0 : index
    %7 = vector.load %arg3[%6, %c0_5, %c0_6] : memref<1x1x128xf32, #tpu.memory_space<vmem>>, vector<1x1x128xf32>
    %8 = vector.shape_cast %7 : vector<1x1x128xf32> to vector<1x128xf32>
    %9 = vector.broadcast %5 : vector<8x1xf32> to vector<8x128xf32>
    %10 = vector.broadcast %8 : vector<1x128xf32> to vector<8x128xf32>
    %11 = arith.addf %9, %10 : vector<8x128xf32>
    %12 = arith.addf %11, %2 : vector<8x128xf32>
    %cst_7 = arith.constant 0.000000e+00 : f32
    %13 = vector.broadcast %cst_7 : f32 to vector<8x128xf32>
    %14 = arith.maximumf %12, %13 : vector<8x128xf32>
    %c0_8 = arith.constant 0 : index
    %c0_9 = arith.constant 0 : index
    %15 = vector.load %arg6[%c0_8, %c0_9] : memref<8x128xf32, #tpu.memory_space<vmem>>, vector<8x128xf32>
    tpu.vector_store %arg6[%c0_8, %c0_9], %14 {strides = array<i32>} : memref<8x128xf32, #tpu.memory_space<vmem>>, vector<8x128xf32>,
    return
  }
  func.func @transform_0(%arg0: i32, %arg1: i32) -> (i32, i32, i32) {
    %c0_i32 = arith.constant 0 : i32
    %c0_i32_0 = arith.constant 0 : i32
    %c0_i32_1 = arith.constant 0 : i32
    %c0_i32_2 = arith.constant 0 : i32
    return %c0_i32, %c0_i32_0, %c0_i32_1 : i32, i32, i32
  }
  func.func @transform_1(%arg0: i32, %arg1: i32) -> (i32, i32, i32) {
    %c0_i32 = arith.constant 0 : i32
    %c0_i32_0 = arith.constant 0 : i32
    %c0_i32_1 = arith.constant 0 : i32
    %c0_i32_2 = arith.constant 0 : i32
    return %c0_i32, %c0_i32_0, %c0_i32_1 : i32, i32, i32
  }
  func.func @transform_2(%arg0: i32, %arg1: i32) -> (i32, i32) {
    %c0_i32 = arith.constant 0 : i32
    %c0_i32_0 = arith.constant 0 : i32
    return %arg0, %c0_i32 : i32, i32
  }
  func.func @transform_3(%arg0: i32, %arg1: i32) -> (i32, i32) {
    %c0_i32 = arith.constant 0 : i32
    %c0_i32_0 = arith.constant 0 : i32
    return %arg1, %c0_i32 : i32, i32
  }
  func.func @transform_4(%arg0: i32, %arg1: i32) -> (i32, i32) {
    %c0_i32 = arith.constant 0 : i32
    return %arg0, %arg1 : i32, i32
  }
}

</mosaic_0001>

<bundles_post_ra>
// kernel: tpu_custom_call.1
= control target key start
LH: loop header
LB: loop body
LE: loop exit
PB: predicated region body
PF: predicated region fallthrough
CT: control target
= control target key end

     0   :  { %9 = vsyncpa [#allocation3], 0  ;;  %s305_s0 = inlined_call_operand.vmem [shape: f32[1,8,1], index: 0, kind: input, shape index: {}]   ;;  %s306_s1 = inlined_call_operand.vmem [shape: f32[1,1,128], index: 1, kind: input, shape index: {}]   ;;  %s307_s2 = inlined_call_operand.vmem [shape: f32[8,128], index: 2, kind: input, shape index: {}]   ;;  %s308_s3 = inlined_call_operand.hbm [shape: f32[128,128], index: 3, kind: input, shape index: {}]   ;;  %s309_s4 = inlined_call_operand.hbm [shape: f32[8,128], index: 4, kind: output, shape index: {}]  }
   0x1   :  { %10 = vsyncpa [#allocation4], 0  ;;  %s258_s15 = smov [#allocation2]  }
   0x2   :  { %s22_s16 = sshll.u32 %s258_s15, 4  ;;  %s23_s16 = int_to_ptr.vmem [resolvable:$true] %s22_s16 }
   0x3   :  { %s222_s17 = scalar_lea.vmem %s23_s16, 2048  ;;  %p227_p1 = scmp.lt.s32.totalorder %s23_s16, %s23_s16 }
   0x4   :  { %p223_p0 = scmp.ne.s32.totalorder %s23_s16, %s222_s17  ;;  %p228_p2 = scmp.lt.s32.totalorder %s222_s17, %s222_s17 }
   0x6   :  { %p229_p3 = por %p228_p2, %p227_p1 }
   0x8   :  { %p230_p4 = pnand %p229_p3, %p223_p0 }
   0xa   :  { %233 = shalt.err (!%p230_p4)
}
   0xb   :  { %s259_s18 = smov 128   ;;  %s260_s19 = smov 8  }
   0xc   :  { %28 = dma.hbm_to_vmem [thread:$0]  %s308_s3, 2048, %s23_s16, [#allocation3], %s259_s18, %s259_s18, %s260_s19  }
   0xd   :  { %254 = dma.done.wait [#allocation3], 2048  }
   0xe   :  { %255 = vsyncadd [#allocation3], 4294965248  ;;  %v261_v0 = vmov 0.0   ;;  %vm262_vm0 = vmmov 0   ;;  %v263_v1 = vmov 0   ;;  %v48_v2 = vld [vmem:[#allocation2 + $0x78] sm:$0xff] }
   0xf   :  { %171 = vmatprep.subr.mxu0 %v261_v0  ;;  %203 = vmatprep.mubr.msk.f32.mxu0 %vm262_vm0, %v261_v0  ;;  %v47_v3 = vld [vmem:[#allocation2 + $0x70] sm:$0xff]  ;;  %v121_v4 = vld [vmem:[%s305_s0] sm:$0xff]  ;;  %v46_v5 = vld [vmem:[#allocation2 + $0x68] sm:$0xff]  ;;  %s264_s26 = smov [#allocation5]  }
  0x10   :  { %213 = vset.pattern.permute.xlu0 %v263_v1  ;;  %172 = vmatpush3.xpose.msra.mxu0 %v48_v2  ;;  %v45_v6 = vld [vmem:[#allocation2 + $0x60] sm:$0xff]  ;;  %v44_v7 = vld [vmem:[#allocation2 + $0x58] sm:$0xff]  ;;  %v43_v8 = vld [vmem:[#allocation2 + $0x50] sm:$0xff]  ;;  %s144_s27 = sshll.u32 %s264_s26, 4  ;;  %s145_s27 = int_to_ptr.vmem [resolvable:$true] %s144_s27 }
  0x11   :  { %173 = vmatprep.subr.mxu0 %v261_v0  ;;  %125 = vperm.xlu0 %213, %v121_v4   ;;  %v42_v9 = vld [vmem:[#allocation2 + $0x48] sm:$0xff]  ;;  %v41_v10 = vld [vmem:[#allocation2 + $0x40] sm:$0xff]  ;;  %v40_v11 = vld [vmem:[#allocation2 + $0x38] sm:$0xff]  ;;  %s234_s28 = scalar_lea.vmem %s145_s27, 128  ;;  %p239_p6 = scmp.lt.s32.totalorder %s145_s27, %s145_s27 }
  0x12   :  { %v39_v12 = vld [vmem:[#allocation2 + $0x30] sm:$0xff]  ;;  %v38_v13 = vld [vmem:[#allocation2 + $0x28] sm:$0xff]  ;;  %v37_v14 = vld [vmem:[#allocation2 + $0x20] sm:$0xff]  ;;  %p235_p5 = scmp.ne.s32.totalorder %s145_s27, %s234_s28  ;;  %p240_p7 = scmp.lt.s32.totalorder %s234_s28, %s234_s28 }
  0x13   :  { %v36_v15 = vld [vmem:[#allocation2 + $0x18] sm:$0xff]  ;;  %v35_v16 = vld [vmem:[#allocation2 + $0x10] sm:$0xff]  ;;  %v34_v17 = vld [vmem:[#allocation2 + $0x8] sm:$0xff] }
  0x14   :  { %174 = vmatpush3.xpose.msra.mxu0 %v47_v3  ;;  %v33_v18 = vld [vmem:[#allocation2] sm:$0xff]  ;;  %v32_v19 = vld [vmem:[%s307_s2] sm:$0xff]  ;;  %p241_p8 = por %p240_p7, %p239_p6 }
  0x15   :  { %175 = vmatprep.subr.mxu0 %v261_v0  ;;  %v153_v20 = vld [vmem:[%s306_s1] ss:$0 sm:$0xff] }
  0x16   :  { %p242_p9 = pnand %p241_p8, %p235_p5 }
  0x18   :  { %176 = vmatpush3.xpose.msra.mxu0 %v46_v5 }
  0x19   :  { %177 = vmatprep.subr.mxu0 %v261_v0 }
  0x1c   :  { %178 = vmatpush3.xpose.msra.mxu0 %v45_v6 }
  0x1d   :  { %179 = vmatprep.subr.mxu0 %v261_v0 }
  0x20   :  { %180 = vmatpush3.xpose.msra.mxu0 %v44_v7 }
  0x21   :  { %181 = vmatprep.subr.mxu0 %v261_v0 }
  0x24   :  { %182 = vmatpush3.xpose.msra.mxu0 %v43_v8 }
  0x25   :  { %183 = vmatprep.subr.mxu0 %v261_v0 }
  0x28   :  { %184 = vmatpush3.xpose.msra.mxu0 %v42_v9 }
  0x29   :  { %185 = vmatprep.subr.mxu0 %v261_v0 }
  0x2c   :  { %186 = vmatpush3.xpose.msra.mxu0 %v41_v10 }
  0x2d   :  { %187 = vmatprep.subr.mxu0 %v261_v0 }
  0x30   :  { %188 = vmatpush3.xpose.msra.mxu0 %v40_v11 }
  0x31   :  { %189 = vmatprep.subr.mxu0 %v261_v0 }
  0x34   :  { %190 = vmatpush3.xpose.msra.mxu0 %v39_v12 }
  0x35   :  { %191 = vmatprep.subr.mxu0 %v261_v0 }
  0x38   :  { %192 = vmatpush3.xpose.msra.mxu0 %v38_v13 }
  0x39   :  { %193 = vmatprep.subr.mxu0 %v261_v0 }
  0x3c   :  { %194 = vmatpush3.xpose.msra.mxu0 %v37_v14 }
  0x3d   :  { %195 = vmatprep.subr.mxu0 %v261_v0 }
  0x40   :  { %196 = vmatpush3.xpose.msra.mxu0 %v36_v15 }
  0x41   :  { %197 = vmatprep.subr.mxu0 %v261_v0 }
  0x44   :  { %198 = vmatpush3.xpose.msra.mxu0 %v35_v16 }
  0x45   :  { %199 = vmatprep.subr.mxu0 %v261_v0 }
  0x48   :  { %200 = vmatpush3.xpose.msra.mxu0 %v34_v17 }
  0x49   :  { %201 = vmatprep.subr.mxu0 %v261_v0 }
  0x4c   :  { %202 = vmatpush3.xpose.msra.mxu0 %v33_v18 }
  0x4f   :  { %204 = vmatmul.mubr.f32.vlgmr.msra.gmra.mxu0 %v32_v19 }
  0x8c   :  { %v126_v21 = vpop.permute.xlu0 %125 }
  0x8d   :  { %v134_v22 = vadd.f32 %v153_v20, %v126_v21 }
 0x10f   :  { %v115_v23 = vpop.f32.mrf.mxu0 }
 0x110   :  { %v135_v24 = vadd.f32 %v134_v22, %v115_v23 }
 0x111   :  { %v205_v25 = vpop.f32.mrf.mxu0 }
 0x112   :  { %v136_v26 = vmax.f32 %v135_v24, 0.0 }
 0x114   :  { %137 = vst [vmem:[#allocation5] sm:$0xff] %v136_v26 }
 0x115   :  { %245 = shalt.err (!%p242_p9)
}
 0x116   :  { %147 = dma.vmem_to_hbm [thread:$0]  %s145_s27, 128, %s309_s4, [#allocation4]  }
 0x117   :  { %256 = dma.done.wait [#allocation4], 128  }
 0x118   :  { %257 = vsyncadd [#allocation4], 4294967168 }
 0x119   :  { %151 = vsyncpa [#allocation3], 1 }
 0x11a   :  { %152 = vsyncpa [#allocation4], 1 }

</bundles_post_ra>
